<compile_context>
chip_gen: v7x
topology: tpu7x:2x2x1
jax: 0.10.0
libtpu: 0.0.40
codegen_flags: <defaults>
</compile_context>

<pallas_src>
import jax
import jax.numpy as jnp
from jax.experimental import pallas as pl
from jax.experimental.pallas import tpu as pltpu

_LANE = 128
_MAX_TILE_B = 2048          # lanes per grid step; tiny VMEM footprint on all gens
_OUT_F = 8                  # 4 (head1) + 4 (head2)


def _round_up(n, m):
    return ((n + m - 1) // m) * m


def _fused_affine_kernel(w_ref, b_ref, x_ref, o_ref):
    # w_ref: (8, 3), b_ref: (8, 1), x_ref: (3, TB), o_ref: (8, TB)
    # Single MXU push per tile, f32 accumulation, lane-broadcast bias add.
    o_ref[...] = (jnp.dot(w_ref[...], x_ref[...],
                          preferred_element_type=jnp.float32)
                  + b_ref[...]).astype(o_ref.dtype)


def fuse_params(p):
    """Collapse linear->heads into one affine map. Returns (W_eff^T (8,3), b_eff^T (8,1))."""
    wh = jnp.concatenate([p["wh1"], p["wh2"]], axis=1)      # (2, 8)
    bh = jnp.concatenate([p["bh1"], p["bh2"]], axis=1)      # (1, 8)
    w_eff = p["w0"] @ wh                                    # (3, 8)
    b_eff = p["b0"] @ wh + bh                               # (1, 8)
    return w_eff.T, b_eff.T                                 # (8, 3), (8, 1)


def multihead_forward(x, params, *, max_tile_b=_MAX_TILE_B):
    """x: (B, 3) float32.  Returns (head1 (B,4), head2 (B,4))."""
    B, in_f = x.shape
    w_t, b_t = fuse_params(params)                          # (8, 3), (8, 1)

    # Pad batch to a lane-aligned tile; put batch on the lane axis.
    tb = min(max_tile_b, _round_up(B, _LANE))
    pb = _round_up(B, tb)
    x_t = jnp.zeros((in_f, pb), x.dtype).at[:, :B].set(x.T)  # (3, PB)

    out_t = pl.pallas_call(
        _fused_affine_kernel,
        out_shape=jax.ShapeDtypeStruct((_OUT_F, pb), x.dtype),
        grid=(pb // tb,),
        in_specs=[
            pl.BlockSpec((_OUT_F, in_f), lambda i: (0, 0)),   # weights: resident
            pl.BlockSpec((_OUT_F, 1), lambda i: (0, 0)),      # bias: resident
            pl.BlockSpec((in_f, tb), lambda i: (0, i)),       # x tile over lanes
        ],
        out_specs=pl.BlockSpec((_OUT_F, tb), lambda i: (0, i)),
        compiler_params=pltpu.CompilerParams(
            dimension_semantics=("parallel",)),
    )(w_t, b_t, x_t)

    y = out_t[:, :B].T                                       # (B, 8)
    return y[:, :4], y[:, 4:]


def init_params(key, dtype=jnp.float32):
    # Deterministic init mirroring nn.Linear shapes (stored transposed: (in, out)):
    #   _linear: (3, 2) / (1, 2);  _head1: (2, 4) / (1, 4);  _head2: (2, 4) / (1, 4)
    ks = jax.random.split(key, 6)
    return {
        "w0":  jax.random.normal(ks[0], (3, 2), dtype) * 0.5,
        "b0":  jax.random.normal(ks[1], (1, 2), dtype) * 0.1,
        "wh1": jax.random.normal(ks[2], (2, 4), dtype) * 0.5,
        "bh1": jax.random.normal(ks[3], (1, 4), dtype) * 0.1,
        "wh2": jax.random.normal(ks[4], (2, 4), dtype) * 0.5,
        "bh2": jax.random.normal(ks[5], (1, 4), dtype) * 0.1,
    }


def reference_forward(x, p):
    # Two-step reference matching the PyTorch module exactly.
    feat = x @ p["w0"] + p["b0"]
    return feat @ p["wh1"] + p["bh1"], feat @ p["wh2"] + p["bh2"]


if __name__ == "__main__":
    key = jax.random.PRNGKey(0)
    k_param, k_x = jax.random.split(key)
    params = init_params(k_param)

    batch = 8
    x = jax.random.normal(k_x, (batch, 3), jnp.float32)

    out1, out2 = multihead_forward(x, params)
    jax.block_until_ready((out1, out2))

    ref1, ref2 = reference_forward(x, params)
    assert out1.shape == (batch, 4) and out2.shape == (batch, 4)
    assert jnp.allclose(out1, ref1, atol=1e-5, rtol=1e-5)
    assert jnp.allclose(out2, ref2, atol=1e-5, rtol=1e-5)

    print("KERNEL_OK")
</pallas_src>

<mosaic_0001>
module attributes {stable_mosaic.version = 11 : i64} {
  func.func @_fused_affine_kernel(%arg0: i32, %arg1: memref<8x3xf32, #tpu.memory_space<vmem>>, %arg2: memref<8x1xf32, #tpu.memory_space<vmem>>, %arg3: memref<3x128xf32, #tpu.memory_space<vmem>>, %arg4: memref<8x128xf32, #tpu.memory_space<vmem>>) attributes {dimension_semantics = [#tpu.dimension_semantics<parallel>], iteration_bounds = array<i64: 1>, scalar_prefetch = 0 : i64, scratch_operands = 0 : i64, tpu.core_type = #tpu.core_type<tc>, window_params = [{pipeline_mode = #tpu.pipeline_mode<synchronous>, transform_indices = @transform_0, window_bounds = array<i64: 8, 3>}, {pipeline_mode = #tpu.pipeline_mode<synchronous>, transform_indices = @transform_1, window_bounds = array<i64: 8, 1>}, {transform_indices = @transform_2, window_bounds = array<i64: 3, 128>}, {transform_indices = @transform_3, window_bounds = array<i64: 8, 128>}]} {
    %c0 = arith.constant 0 : index
    %c0_0 = arith.constant 0 : index
    %0 = vector.load %arg1[%c0, %c0_0] : memref<8x3xf32, #tpu.memory_space<vmem>>, vector<8x3xf32>
    %c0_1 = arith.constant 0 : index
    %c0_2 = arith.constant 0 : index
    %1 = vector.load %arg3[%c0_1, %c0_2] : memref<3x128xf32, #tpu.memory_space<vmem>>, vector<3x128xf32>
    %cst = arith.constant dense<0.000000e+00> : vector<8x128xf32>
    %2 = tpu.matmul %0, %1, %cst {dimension_numbers = #tpu.dot_dimension_numbers<[1], [0], [0], [1], [0, 0, 1, 1], [], []>} : vector<8x3xf32>, vector<3x128xf32>, vector<8x128xf32> -> vector<8x128xf32>
    %c0_3 = arith.constant 0 : index
    %c0_4 = arith.constant 0 : index
    %3 = vector.load %arg2[%c0_3, %c0_4] : memref<8x1xf32, #tpu.memory_space<vmem>>, vector<8x1xf32>
    %4 = vector.broadcast %3 : vector<8x1xf32> to vector<8x128xf32>
    %5 = arith.addf %2, %4 : vector<8x128xf32>
    %c0_5 = arith.constant 0 : index
    %c0_6 = arith.constant 0 : index
    %6 = vector.load %arg4[%c0_5, %c0_6] : memref<8x128xf32, #tpu.memory_space<vmem>>, vector<8x128xf32>
    tpu.vector_store %arg4[%c0_5, %c0_6], %5 {strides = array<i32>} : memref<8x128xf32, #tpu.memory_space<vmem>>, vector<8x128xf32>,
    return
  }
  func.func @transform_0(%arg0: i32) -> (i32, i32) {
    %c0_i32 = arith.constant 0 : i32
    %c0_i32_0 = arith.constant 0 : i32
    %c0_i32_1 = arith.constant 0 : i32
    return %c0_i32, %c0_i32_0 : i32, i32
  }
  func.func @transform_1(%arg0: i32) -> (i32, i32) {
    %c0_i32 = arith.constant 0 : i32
    %c0_i32_0 = arith.constant 0 : i32
    %c0_i32_1 = arith.constant 0 : i32
    return %c0_i32, %c0_i32_0 : i32, i32
  }
  func.func @transform_2(%arg0: i32) -> (i32, i32) {
    %c0_i32 = arith.constant 0 : i32
    %c0_i32_0 = arith.constant 0 : i32
    return %c0_i32, %arg0 : i32, i32
  }
  func.func @transform_3(%arg0: i32) -> (i32, i32) {
    %c0_i32 = arith.constant 0 : i32
    %c0_i32_0 = arith.constant 0 : i32
    return %c0_i32, %arg0 : i32, i32
  }
}

</mosaic_0001>

<bundles_post_ra>
// kernel: tpu_custom_call.1
= control target key start
LH: loop header
LB: loop body
LE: loop exit
PB: predicated region body
PF: predicated region fallthrough
CT: control target
= control target key end

     0   :  { %vm27_vm0 = vcmask 1042432   ;;  %v154_v2 = vmov 0.0   ;;  %vm155_vm1 = vmmov 0   ;;  %vm23_vm2 = vcmask 23552   ;;  %s199_s0 = inlined_call_operand.vmem [shape: f32[8,3], index: 0, kind: input, shape index: {}]   ;;  %s200_s1 = inlined_call_operand.vmem [shape: f32[8,1], index: 1, kind: input, shape index: {}]   ;;  %s201_s2 = inlined_call_operand.vmem [shape: f32[3,128], index: 2, kind: input, shape index: {}]   ;;  %s202_s3 = inlined_call_operand.hbm [shape: f32[8,128], index: 3, kind: output, shape index: {}]  }
   0x1   :  { %v16_v0 = vld [vmem:[%s201_s2] sm:$0x7]  ;;  %120 = vmatprep.subr.mxu0 %v154_v2  ;;  %122 = vmatprep.mubr.msk.f32.mxu0 %vm155_vm1, %v154_v2 }
   0x2   :  { %v15_v1 = vld [vmem:[%s199_s0] sm:$0xff] }
   0x3   :  { %v17_v3 = vld [vmem:[%s200_s1] sm:$0xff] }
   0x4   :  { %8 = vsyncpa [#allocation3], 0  ;;  %121 = vmatpush3.msk.msra.mxu0 %vm27_vm0, %v16_v0  ;;  %v156_v4 = vmov 0   ;;  %s157_s2 = smov [#allocation2]  }
   0x5   :  { %129 = vset.pattern.permute.xlu0 %v156_v4  ;;  %123 = vmatmul.mubr.msk.f32.vlgmr.msra.gmra.mrb[0].mxu0 %vm23_vm2, %v15_v1  ;;  %s108_s18 = sshll.u32 %s157_s2, 4  ;;  %s109_s18 = int_to_ptr.vmem [resolvable:$true] %s108_s18 }
   0x6   :  { %20 = vperm.xlu0 %129, %v17_v3   ;;  %s130_s0 = scalar_lea.vmem %s109_s18, 128  ;;  %p135_p1 = scmp.lt.s32.totalorder %s109_s18, %s109_s18 }
   0x7   :  { %p131_p0 = scmp.ne.s32.totalorder %s109_s18, %s130_s0  ;;  %p136_p2 = scmp.lt.s32.totalorder %s130_s0, %s130_s0 }
   0x9   :  { %p137_p3 = por %p136_p2, %p135_p1 }
   0xb   :  { %p138_p4 = pnand %p137_p3, %p131_p0 }
  0x85   :  { %v21_v5 = vpop.permute.xlu0 %20 }
  0xd8   :  { %v97_v6 = vpop.f32.mrb[0].mxu0 }
  0xd9   :  { %v98_v7 = vadd.f32 %v97_v6, %v21_v5  ;;  %v124_v8 = vpop.f32.mrb[1].mxu0 }
  0xdb   :  { %101 = vst [vmem:[#allocation2] sm:$0xff] %v98_v7 }
  0xdc   :  { %141 = shalt.err (!%p138_p4)
}
  0xdd   :  { %s142_s20 = scalar_lea.hbm %s202_s3, 128 }
  0xde   :  { %p143_p5 = scmp.ne.s32.totalorder %s202_s3, %s142_s20  ;;  %p146_p6 = scmp.lt.u32.totalorder %s142_s20, %s202_s3 }
  0xe0   :  { %p148_p7 = pnand %p146_p6, %p143_p5 }
  0xe2   :  { %151 = shalt.err (!%p148_p7)
}
  0xe3   :  { %111 = dma.vmem_to_hbm [thread:$0]  %s109_s18, 128, %s202_s3, [#allocation3]  }
  0xe4   :  { %152 = dma.done.wait [#allocation3], 128  }
  0xe5   :  { %153 = vsyncadd [#allocation3], 4294967168 }
  0xe6   :  { %115 = vsyncpa [#allocation3], 1 }

</bundles_post_ra>
